<compile_context>
chip_gen: v6e
topology: v6e:2x2x1
jax: 0.10.0
libtpu: 0.0.40
codegen_flags: <defaults>
</compile_context>

<pallas_src>
import jax
import jax.numpy as jnp
from jax.experimental import pallas as pl
from jax.experimental.pallas import tpu as pltpu

_OUT_DIM = 6  # BackboneUpdate always projects to 6 (quaternion-ish update vec)


def _backbone_update_kernel(s_ref, w_ref, b_ref, o_ref):
    # s_ref: (tm, C)   w_ref: (C, 6)   b_ref: (1, 6)   o_ref: (tm, 6)
    s = s_ref[...].astype(jnp.float32)
    upd = jnp.dot(s, w_ref[...].astype(jnp.float32),
                  preferred_element_type=jnp.float32)
    upd = upd + b_ref[...].astype(jnp.float32)
    o_ref[...] = upd.astype(o_ref.dtype)


def backbone_update(s, weight, bias, *, tm=512):
    """BackboneUpdate forward.

    Args:
      s:      [..., C_s] single representation.
      weight: [6, C_s]   PyTorch nn.Linear weight layout.
      bias:   [6]        PyTorch nn.Linear bias.
      tm:     row tile (rows of flattened s per grid step).
    Returns:
      [..., 6] update vector.
    """
    *lead, C = s.shape
    s2d = s.reshape(-1, C)
    N = s2d.shape[0]

    # Effective row tile: as large as requested, but never larger than the
    # (8-aligned) row count; always a multiple of 8 (sublane granularity).
    n_rows_8 = pl.cdiv(N, 8) * 8
    tm_eff = min(tm, n_rows_8)

    # Pad the ragged tail up to a multiple of the tile; padded rows produce
    # garbage outputs that are sliced off below.
    n_pad = pl.cdiv(N, tm_eff) * tm_eff
    if n_pad != N:
        s2d = jnp.pad(s2d, ((0, n_pad - N), (0, 0)))

    w_t = jnp.transpose(weight)          # [C, 6]  (so kernel computes x @ W)
    b_2d = bias.reshape(1, _OUT_DIM)     # [1, 6]

    itemsize = s.dtype.itemsize
    cost = pl.CostEstimate(
        flops=2 * n_pad * C * _OUT_DIM,
        transcendentals=0,
        bytes_accessed=(n_pad * C * itemsize            # read s
                        + n_pad * _OUT_DIM * itemsize   # write update
                        + C * _OUT_DIM * 4 + _OUT_DIM * 4),
    )

    out = pl.pallas_call(
        _backbone_update_kernel,
        out_shape=jax.ShapeDtypeStruct((n_pad, _OUT_DIM), s.dtype),
        grid_spec=pltpu.PrefetchScalarGridSpec(
            num_scalar_prefetch=0,
            grid=(n_pad // tm_eff,),
            in_specs=[
                pl.BlockSpec((tm_eff, C), lambda i: (i, 0)),    # s tile
                pl.BlockSpec((C, _OUT_DIM), lambda i: (0, 0)),  # W^T (resident)
                pl.BlockSpec((1, _OUT_DIM), lambda i: (0, 0)),  # bias (resident)
            ],
            out_specs=pl.BlockSpec((tm_eff, _OUT_DIM), lambda i: (i, 0)),
        ),
        compiler_params=pltpu.CompilerParams(
            dimension_semantics=("parallel",)),
        cost_estimate=cost,
    )(s2d, w_t, b_2d)

    return out[:N].reshape(*lead, _OUT_DIM)


def _reference(s, weight, bias):
    return s @ weight.T + bias


if __name__ == "__main__":
    single_dim = 128          # C_s (lane-aligned for the demo; any C works)
    batch, n_res = 2, 8       # s: [batch, N_res, C_s]

    key = jax.random.PRNGKey(0)
    k_s, k_w, k_b = jax.random.split(key, 3)

    s = jax.random.normal(k_s, (batch, n_res, single_dim), dtype=jnp.float32)

    # In the real module Linear(..., init='final') starts at zero; use small
    # random values here so the kernel exercises a nontrivial path.
    w = jax.random.normal(k_w, (_OUT_DIM, single_dim), dtype=jnp.float32) * 0.02
    b = jax.random.normal(k_b, (_OUT_DIM,), dtype=jnp.float32) * 0.01

    out = backbone_update(s, w, b)
    out = jax.block_until_ready(out)

    ref = _reference(s, w, b)
    assert out.shape == (batch, n_res, _OUT_DIM)
    assert jnp.allclose(out, ref, atol=1e-5, rtol=1e-5)

    # Also exercise a ragged row count (N not divisible by the tile).
    s2 = jax.random.normal(k_s, (3, 5, single_dim), dtype=jnp.float32)
    out2 = jax.block_until_ready(backbone_update(s2, w, b))
    assert out2.shape == (3, 5, _OUT_DIM)
    assert jnp.allclose(out2, _reference(s2, w, b), atol=1e-5, rtol=1e-5)

    print("KERNEL_OK")
</pallas_src>

<mosaic_0001>
module attributes {stable_mosaic.version = 11 : i64} {
  func.func @_backbone_update_kernel(%arg0: i32, %arg1: memref<16x128xf32, #tpu.memory_space<vmem>>, %arg2: memref<128x6xf32, #tpu.memory_space<vmem>>, %arg3: memref<1x6xf32, #tpu.memory_space<vmem>>, %arg4: memref<16x6xf32, #tpu.memory_space<vmem>>) attributes {dimension_semantics = [#tpu.dimension_semantics<parallel>], iteration_bounds = array<i64: 1>, scalar_prefetch = 0 : i64, scratch_operands = 0 : i64, tpu.core_type = #tpu.core_type<tc>, window_params = [{transform_indices = @transform_0, window_bounds = array<i64: 16, 128>}, {pipeline_mode = #tpu.pipeline_mode<synchronous>, transform_indices = @transform_1, window_bounds = array<i64: 128, 6>}, {pipeline_mode = #tpu.pipeline_mode<synchronous>, transform_indices = @transform_2, window_bounds = array<i64: 1, 6>}, {transform_indices = @transform_3, window_bounds = array<i64: 16, 6>}]} {
    %c0 = arith.constant 0 : index
    %c0_0 = arith.constant 0 : index
    %0 = vector.load %arg1[%c0, %c0_0] : memref<16x128xf32, #tpu.memory_space<vmem>>, vector<16x128xf32>
    %c0_1 = arith.constant 0 : index
    %c0_2 = arith.constant 0 : index
    %1 = vector.load %arg2[%c0_1, %c0_2] : memref<128x6xf32, #tpu.memory_space<vmem>>, vector<128x6xf32>
    %cst = arith.constant dense<0.000000e+00> : vector<16x6xf32>
    %2 = tpu.matmul %0, %1, %cst {dimension_numbers = #tpu.dot_dimension_numbers<[1], [0], [0], [1], [0, 0, 1, 1], [], []>} : vector<16x128xf32>, vector<128x6xf32>, vector<16x6xf32> -> vector<16x6xf32>
    %c0_3 = arith.constant 0 : index
    %c0_4 = arith.constant 0 : index
    %3 = vector.load %arg3[%c0_3, %c0_4] : memref<1x6xf32, #tpu.memory_space<vmem>>, vector<1x6xf32>
    %4 = vector.broadcast %3 : vector<1x6xf32> to vector<16x6xf32>
    %5 = arith.addf %2, %4 : vector<16x6xf32>
    %c0_5 = arith.constant 0 : index
    %c0_6 = arith.constant 0 : index
    %6 = vector.load %arg4[%c0_5, %c0_6] : memref<16x6xf32, #tpu.memory_space<vmem>>, vector<16x6xf32>
    tpu.vector_store %arg4[%c0_5, %c0_6], %5 {strides = array<i32>} : memref<16x6xf32, #tpu.memory_space<vmem>>, vector<16x6xf32>,
    return
  }
  func.func @transform_0(%arg0: i32) -> (i32, i32) {
    %c0_i32 = arith.constant 0 : i32
    %c0_i32_0 = arith.constant 0 : i32
    return %arg0, %c0_i32 : i32, i32
  }
  func.func @transform_1(%arg0: i32) -> (i32, i32) {
    %c0_i32 = arith.constant 0 : i32
    %c0_i32_0 = arith.constant 0 : i32
    %c0_i32_1 = arith.constant 0 : i32
    return %c0_i32, %c0_i32_0 : i32, i32
  }
  func.func @transform_2(%arg0: i32) -> (i32, i32) {
    %c0_i32 = arith.constant 0 : i32
    %c0_i32_0 = arith.constant 0 : i32
    %c0_i32_1 = arith.constant 0 : i32
    return %c0_i32, %c0_i32_0 : i32, i32
  }
  func.func @transform_3(%arg0: i32) -> (i32, i32) {
    %c0_i32 = arith.constant 0 : i32
    %c0_i32_0 = arith.constant 0 : i32
    return %arg0, %c0_i32 : i32, i32
  }
}

</mosaic_0001>

<bundles_post_ra>
// kernel: tpu_custom_call.1
= control target key start
LH: loop header
LB: loop body
LE: loop exit
PB: predicated region body
PF: predicated region fallthrough
CT: control target
= control target key end

     0   :  { %vm114_vm0 = vcmask 48128   ;;  %s258_s1 = inlined_call_operand.vmem [shape: f32[128,6], index: 1, kind: input, shape index: {}]   ;;  %s259_s0 = inlined_call_operand.vmem [shape: f32[16,128], index: 0, kind: input, shape index: {}]   ;;  %s260_s2 = inlined_call_operand.vmem [shape: f32[1,6], index: 2, kind: input, shape index: {}]   ;;  %s261_s3 = inlined_call_operand.vmem [shape: f32[16,6], index: 3, kind: output, shape index: {}]  }
   0x1   :  { %v31_v0 = vld [vmem:[%s258_s1 + $0x78] sm:$0xff]  ;;  %v30_v1 = vld [vmem:[%s258_s1 + $0x70] sm:$0xff]  ;;  %v29_v2 = vld [vmem:[%s258_s1 + $0x68] sm:$0xff] }
   0x2   :  { %140 = vmatprep.subr.mxu0 %v31_v0  ;;  %v28_v3 = vld [vmem:[%s258_s1 + $0x60] sm:$0xff]  ;;  %v27_v5 = vld [vmem:[%s258_s1 + $0x58] sm:$0xff]  ;;  %v26_v6 = vld [vmem:[%s258_s1 + $0x50] sm:$0xff] }
   0x3   :  { %141 = vmatpush3.msra.mxu0 %v31_v0  ;;  %v14_v4 = vld [vmem:[%s259_s0] sm:$0xff]  ;;  %v25_v7 = vld [vmem:[%s258_s1 + $0x48] sm:$0xff]  ;;  %v23_v9 = vld [vmem:[%s258_s1 + $0x38] sm:$0xff] }
   0x4   :  { %142 = vmatprep.subr.mxu0 %v30_v1  ;;  %172 = vmatprep.mubr.f32.mxu0 %v14_v4  ;;  %v24_v8 = vld [vmem:[%s258_s1 + $0x40] sm:$0xff]  ;;  %v22_v10 = vld [vmem:[%s258_s1 + $0x30] sm:$0xff]  ;;  %v21_v11 = vld [vmem:[%s258_s1 + $0x28] sm:$0xff] }
   0x5   :  { %143 = vmatpush3.msra.mxu0 %v30_v1  ;;  %v20_v12 = vld [vmem:[%s258_s1 + $0x20] sm:$0xff]  ;;  %v19_v13 = vld [vmem:[%s258_s1 + $0x18] sm:$0xff]  ;;  %v18_v14 = vld [vmem:[%s258_s1 + $0x10] sm:$0xff] }
   0x6   :  { %144 = vmatprep.subr.mxu0 %v29_v2  ;;  %v17_v15 = vld [vmem:[%s258_s1 + $0x8] sm:$0xff]  ;;  %v16_v16 = vld [vmem:[%s258_s1] sm:$0xff] }
   0x7   :  { %145 = vmatpush3.msra.mxu0 %v29_v2  ;;  %v15_v17 = vld [vmem:[%s259_s0 + $0x8] sm:$0xff]  ;;  %v121_v18 = vld [vmem:[%s260_s2] ss:$0 sm:$0xff] }
   0x8   :  { %146 = vmatprep.subr.mxu0 %v28_v3 }
   0x9   :  { %147 = vmatpush3.msra.mxu0 %v28_v3 }
   0xa   :  { %148 = vmatprep.subr.mxu0 %v27_v5 }
   0xb   :  { %149 = vmatpush3.msra.mxu0 %v27_v5 }
   0xc   :  { %150 = vmatprep.subr.mxu0 %v26_v6 }
   0xd   :  { %151 = vmatpush3.msra.mxu0 %v26_v6 }
   0xe   :  { %152 = vmatprep.subr.mxu0 %v25_v7 }
   0xf   :  { %153 = vmatpush3.msra.mxu0 %v25_v7 }
  0x10   :  { %154 = vmatprep.subr.mxu0 %v24_v8 }
  0x11   :  { %155 = vmatpush3.msra.mxu0 %v24_v8 }
  0x12   :  { %156 = vmatprep.subr.mxu0 %v23_v9 }
  0x13   :  { %157 = vmatpush3.msra.mxu0 %v23_v9 }
  0x14   :  { %158 = vmatprep.subr.mxu0 %v22_v10 }
  0x15   :  { %159 = vmatpush3.msra.mxu0 %v22_v10 }
  0x16   :  { %160 = vmatprep.subr.mxu0 %v21_v11 }
  0x17   :  { %161 = vmatpush3.msra.mxu0 %v21_v11 }
  0x18   :  { %162 = vmatprep.subr.mxu0 %v20_v12 }
  0x19   :  { %163 = vmatpush3.msra.mxu0 %v20_v12 }
  0x1a   :  { %164 = vmatprep.subr.mxu0 %v19_v13 }
  0x1b   :  { %165 = vmatpush3.msra.mxu0 %v19_v13 }
  0x1c   :  { %166 = vmatprep.subr.mxu0 %v18_v14 }
  0x1d   :  { %167 = vmatpush3.msra.mxu0 %v18_v14 }
  0x1e   :  { %168 = vmatprep.subr.mxu0 %v17_v15 }
  0x1f   :  { %169 = vmatpush3.msra.mxu0 %v17_v15 }
  0x20   :  { %170 = vmatprep.subr.mxu0 %v16_v16 }
  0x21   :  { %171 = vmatpush3.msra.mxu0 %v16_v16 }
  0x22   :  { %173 = vmatmul.mubr.f32.vlgmr.msra.gmra.mxu0 %v15_v17 }
  0xe2   :  { %v174_v19 = vpop.f32.mrf.mxu0 }
  0xe3   :  { %v111_v20 = vadd.f32 %v174_v19, %v121_v18 }
  0xe4   :  { %v105_v21 = vpop.f32.mrf.mxu0 }
  0xe5   :  { %116 = vst.msk [vmem:[%s261_s3 + $0x8] sm:$0xff] %vm114_vm0, %v111_v20  ;;  %v106_v22 = vadd.f32 %v121_v18, %v105_v21 }
  0xe7   :  { %115 = vst.msk [vmem:[%s261_s3] sm:$0xff] %vm114_vm0, %v106_v22 }

</bundles_post_ra>
